<compile_context>
chip_gen: v5e
topology: v5e:2x2
jax: 0.10.0
libtpu: 0.0.40
codegen_flags: <defaults>
</compile_context>

<pallas_src>
import functools

import jax
import jax.numpy as jnp
from jax.experimental import pallas as pl
from jax.experimental.pallas import tpu as pltpu


def _tconv_gn_kernel(x_ref, w_ref, b_ref, gamma_ref, beta_ref, o_ref, *, eps):
    """Fused ConvTranspose2d(k=2,s=2) + bias + GroupNorm for a block of samples.

    x_ref     : (BN, Cin, HW)      f32   input samples, spatial flattened
    w_ref     : (rows, Cin)        bf16  rows = 4*Cout, row = co*4 + (ky*2+kx)
    b_ref     : (G, rows/G, 1)     f32   conv bias per row, grouped
    gamma_ref : (G, rows/G, 1)     f32   GN weight per row, grouped
    beta_ref  : (G, rows/G, 1)     f32   GN bias per row, grouped
    o_ref     : (BN, rows, HW)     f32   normalized output slab
    """
    w = w_ref[...]                                   # (rows, Cin) bf16
    b3 = b_ref[...]                                  # (G, rpg, 1)
    gamma3 = gamma_ref[...]
    beta3 = beta_ref[...]

    bn, _, hw = x_ref.shape
    rows = w_ref.shape[0]
    n_groups, rpg, _ = b_ref.shape
    hw_f = float(hw)
    cnt = float(rpg * hw)            # elements per (sample, group) = cpg*(2H)*(2W)

    for s in range(bn):              # BN is small & static (unrolled)
        xb = x_ref[s].astype(jnp.bfloat16)                          # (Cin, HW)
        # Transposed conv: all 4 taps in one MXU matmul (bias folded in later).
        c = jnp.dot(w, xb, preferred_element_type=jnp.float32)      # (rows, HW)
        c3 = c.reshape(n_groups, rpg, hw)                           # view

        # Per-row sums (lane reduce, XLU), bias folded in algebraically:
        #   y = c + b  =>  sum y = sum c + HW*b ; sum y^2 = sum c^2 + 2b*sum c + HW*b^2
        rs = jnp.sum(c3, axis=2, keepdims=True)                     # (G, rpg, 1)
        rs2 = jnp.sum(c3 * c3, axis=2, keepdims=True)               # (G, rpg, 1)
        rs_b = rs + hw_f * b3
        rs2_b = rs2 + 2.0 * b3 * rs + hw_f * (b3 * b3)

        # Group statistics (tiny cross-sublane reduce).
        gs = jnp.sum(rs_b, axis=1, keepdims=True)                   # (G, 1, 1)
        gs2 = jnp.sum(rs2_b, axis=1, keepdims=True)                 # (G, 1, 1)
        mean = gs / cnt
        var = gs2 / cnt - mean * mean
        inv = jax.lax.rsqrt(jnp.maximum(var, 0.0) + eps)            # (G,1,1) EUP

        # Fold GN affine + conv bias into one per-row scale/shift:
        #   out = (c + b - mean)*inv*gamma + beta = c*scale + shift
        scale = inv * gamma3                                        # (G, rpg, 1)
        shift = beta3 + (b3 - mean) * scale                         # (G, rpg, 1)

        out3 = c3 * scale + shift                                   # 2 VPU passes
        o_ref[s] = out3.reshape(rows, hw).astype(o_ref.dtype)


def transp_conv_block_forward(x_nchw, params, *, num_groups=8, eps=1e-5):
    """TranspConvBlock forward.  Input/output layout: NCHW (PyTorch convention)."""
    n, c_in, h, w = x_nchw.shape
    w_pt = params["w"]                       # (Cin, Cout, 2, 2) PyTorch layout
    c_out = w_pt.shape[1]
    hw = h * w
    rows = 4 * c_out
    cpg = c_out // num_groups
    rpg = 4 * cpg                            # rows per group (contiguous block)

    # --- wrapper-side layout glue (tiny constants only; x stays f32) ---
    # W[ci,co,ky,kx] -> wt[co*4 + ky*2 + kx, ci]   (channel-major rows)
    wt = jnp.transpose(w_pt, (1, 2, 3, 0)).reshape(rows, c_in).astype(jnp.bfloat16)
    b3 = jnp.repeat(params["b"], 4).reshape(num_groups, rpg, 1).astype(jnp.float32)
    gamma3 = jnp.repeat(params["gamma"], 4).reshape(num_groups, rpg, 1).astype(jnp.float32)
    beta3 = jnp.repeat(params["beta"], 4).reshape(num_groups, rpg, 1).astype(jnp.float32)

    x3 = x_nchw.reshape(n, c_in, hw)         # f32; bf16 cast happens in-kernel

    # Batch samples per grid step to amortize per-step overhead, but keep >=2
    # steps so both v7x TensorCores get work (neutral on v5e/v6e).
    bn = n // 2 if (n >= 2 and n % 2 == 0) else 1
    num_steps = n // bn

    kernel = functools.partial(_tconv_gn_kernel, eps=eps)

    y_flat = pl.pallas_call(
        kernel,
        out_shape=jax.ShapeDtypeStruct((n, rows, hw), jnp.float32),
        grid=(num_steps,),
        in_specs=[
            pl.BlockSpec((bn, c_in, hw), lambda i: (i, 0, 0)),      # samples
            pl.BlockSpec((rows, c_in), lambda i: (0, 0)),           # weights
            pl.BlockSpec((num_groups, rpg, 1), lambda i: (0, 0, 0)),  # bias
            pl.BlockSpec((num_groups, rpg, 1), lambda i: (0, 0, 0)),  # gamma
            pl.BlockSpec((num_groups, rpg, 1), lambda i: (0, 0, 0)),  # beta
        ],
        out_specs=pl.BlockSpec((bn, rows, hw), lambda i: (i, 0, 0)),
        compiler_params=pltpu.CompilerParams(
            dimension_semantics=("parallel",)),
    )(x3, wt, b3, gamma3, beta3)

    # (N, 4*Cout, HW) -> (N, Cout, 2H, 2W): interleave the 4 taps spatially.
    # row = co*4 + ky*2 + kx
    y6 = y_flat.reshape(n, c_out, 2, 2, h, w)          # (n, co, ky, kx, h, w)
    out = jnp.transpose(y6, (0, 1, 4, 2, 5, 3)).reshape(n, c_out, 2 * h, 2 * w)
    return out


# ---------------- pure-JAX reference (for in-script correctness check) -------
def _group_norm_ref(x, gamma, beta, num_groups=8, eps=1e-5):
    n, c, h, w = x.shape
    xg = x.reshape(n, num_groups, c // num_groups, h, w)
    mean = xg.mean(axis=(2, 3, 4), keepdims=True)
    var = xg.var(axis=(2, 3, 4), keepdims=True)
    xn = ((xg - mean) / jnp.sqrt(var + eps)).reshape(n, c, h, w)
    return xn * gamma[None, :, None, None] + beta[None, :, None, None]


def _ref_forward(x, params, num_groups=8, eps=1e-5):
    w_pt = params["w"]                                           # (Cin,Cout,2,2)
    # ConvTranspose2d == zero-dilated conv with flipped, axis-swapped kernel.
    w_conv = jnp.flip(w_pt, axis=(2, 3)).transpose(1, 0, 2, 3)   # OIHW
    y = jax.lax.conv_general_dilated(
        x, w_conv, window_strides=(1, 1), padding=((1, 1), (1, 1)),
        lhs_dilation=(2, 2),
        dimension_numbers=("NCHW", "OIHW", "NCHW"),
        precision=jax.lax.Precision.HIGHEST)
    y = y + params["b"][None, :, None, None]
    return _group_norm_ref(y, params["gamma"], params["beta"], num_groups, eps)


if __name__ == "__main__":
    N, C_IN, C_OUT, H, W = 2, 32, 16, 16, 16

    key = jax.random.PRNGKey(0)
    kx, kw, kb, kg, kbe = jax.random.split(key, 5)

    x = jax.random.normal(kx, (N, C_IN, H, W), dtype=jnp.float32)
    params = {
        "w": 0.1 * jax.random.normal(kw, (C_IN, C_OUT, 2, 2), jnp.float32),
        "b": 0.1 * jax.random.normal(kb, (C_OUT,), jnp.float32),
        "gamma": 1.0 + 0.1 * jax.random.normal(kg, (C_OUT,), jnp.float32),
        "beta": 0.1 * jax.random.normal(kbe, (C_OUT,), jnp.float32),
    }

    out = jax.block_until_ready(transp_conv_block_forward(x, params))
    ref = jax.block_until_ready(_ref_forward(x, params))

    assert out.shape == (N, C_OUT, 2 * H, 2 * W)
    # bf16 matmul inputs (f32 accumulate) => slightly looser tolerance than f32.
    assert bool(jnp.allclose(out, ref, atol=2e-2, rtol=2e-2)), (
        "Pallas TranspConvBlock output mismatch vs JAX reference")

    print("KERNEL_OK")
</pallas_src>

<mosaic_0001>
module attributes {stable_mosaic.version = 11 : i64} {
  func.func @_tconv_gn_kernel(%arg0: i32, %arg1: memref<1x32x256xf32, #tpu.memory_space<vmem>>, %arg2: memref<64x32xbf16, #tpu.memory_space<vmem>>, %arg3: memref<8x8x1xf32, #tpu.memory_space<vmem>>, %arg4: memref<8x8x1xf32, #tpu.memory_space<vmem>>, %arg5: memref<8x8x1xf32, #tpu.memory_space<vmem>>, %arg6: memref<1x64x256xf32, #tpu.memory_space<vmem>>) attributes {dimension_semantics = [#tpu.dimension_semantics<parallel>], iteration_bounds = array<i64: 2>, scalar_prefetch = 0 : i64, scratch_operands = 0 : i64, tpu.core_type = #tpu.core_type<tc>, window_params = [{transform_indices = @transform_0, window_bounds = array<i64: 1, 32, 256>}, {pipeline_mode = #tpu.pipeline_mode<synchronous>, transform_indices = @transform_1, window_bounds = array<i64: 64, 32>}, {pipeline_mode = #tpu.pipeline_mode<synchronous>, transform_indices = @transform_2, window_bounds = array<i64: 8, 8, 1>}, {pipeline_mode = #tpu.pipeline_mode<synchronous>, transform_indices = @transform_3, window_bounds = array<i64: 8, 8, 1>}, {pipeline_mode = #tpu.pipeline_mode<synchronous>, transform_indices = @transform_4, window_bounds = array<i64: 8, 8, 1>}, {transform_indices = @transform_5, window_bounds = array<i64: 1, 64, 256>}]} {
    %c0 = arith.constant 0 : index
    %c0_0 = arith.constant 0 : index
    %0 = vector.load %arg2[%c0, %c0_0] : memref<64x32xbf16, #tpu.memory_space<vmem>>, vector<64x32xbf16>
    %c0_1 = arith.constant 0 : index
    %c0_2 = arith.constant 0 : index
    %c0_3 = arith.constant 0 : index
    %1 = vector.load %arg3[%c0_1, %c0_2, %c0_3] : memref<8x8x1xf32, #tpu.memory_space<vmem>>, vector<8x8x1xf32>
    %c0_4 = arith.constant 0 : index
    %c0_5 = arith.constant 0 : index
    %c0_6 = arith.constant 0 : index
    %2 = vector.load %arg4[%c0_4, %c0_5, %c0_6] : memref<8x8x1xf32, #tpu.memory_space<vmem>>, vector<8x8x1xf32>
    %c0_7 = arith.constant 0 : index
    %c0_8 = arith.constant 0 : index
    %c0_9 = arith.constant 0 : index
    %3 = vector.load %arg5[%c0_7, %c0_8, %c0_9] : memref<8x8x1xf32, #tpu.memory_space<vmem>>, vector<8x8x1xf32>
    %c0_10 = arith.constant 0 : index
    %c0_11 = arith.constant 0 : index
    %c0_12 = arith.constant 0 : index
    %4 = vector.load %arg1[%c0_10, %c0_11, %c0_12] : memref<1x32x256xf32, #tpu.memory_space<vmem>>, vector<1x32x256xf32>
    %5 = vector.shape_cast %4 : vector<1x32x256xf32> to vector<32x256xf32>
    %6 = arith.truncf %5 : vector<32x256xf32> to vector<32x256xbf16>
    %cst = arith.constant dense<0.000000e+00> : vector<64x256xf32>
    %7 = tpu.matmul %0, %6, %cst {dimension_numbers = #tpu.dot_dimension_numbers<[1], [0], [0], [1], [0, 0, 1, 1], [], []>} : vector<64x32xbf16>, vector<32x256xbf16>, vector<64x256xf32> -> vector<64x256xf32>
    %8 = vector.shape_cast %7 : vector<64x256xf32> to vector<8x8x256xf32>
    %cst_13 = arith.constant dense<0.000000e+00> : vector<8x8xf32>
    %9 = vector.multi_reduction <add>, %8, %cst_13 [2] : vector<8x8x256xf32> to vector<8x8xf32>
    %10 = vector.shape_cast %9 : vector<8x8xf32> to vector<8x8x1xf32>
    %11 = arith.mulf %8, %8 : vector<8x8x256xf32>
    %cst_14 = arith.constant dense<0.000000e+00> : vector<8x8xf32>
    %12 = vector.multi_reduction <add>, %11, %cst_14 [2] : vector<8x8x256xf32> to vector<8x8xf32>
    %13 = vector.shape_cast %12 : vector<8x8xf32> to vector<8x8x1xf32>
    %cst_15 = arith.constant 2.560000e+02 : f32
    %14 = vector.broadcast %cst_15 : f32 to vector<8x8x1xf32>
    %15 = arith.mulf %14, %1 : vector<8x8x1xf32>
    %16 = arith.addf %10, %15 : vector<8x8x1xf32>
    %cst_16 = arith.constant 2.000000e+00 : f32
    %17 = vector.broadcast %cst_16 : f32 to vector<8x8x1xf32>
    %18 = arith.mulf %17, %1 : vector<8x8x1xf32>
    %19 = arith.mulf %18, %10 : vector<8x8x1xf32>
    %20 = arith.addf %13, %19 : vector<8x8x1xf32>
    %21 = arith.mulf %1, %1 : vector<8x8x1xf32>
    %cst_17 = arith.constant 2.560000e+02 : f32
    %22 = vector.broadcast %cst_17 : f32 to vector<8x8x1xf32>
    %23 = arith.mulf %22, %21 : vector<8x8x1xf32>
    %24 = arith.addf %20, %23 : vector<8x8x1xf32>
    %cst_18 = arith.constant dense<0.000000e+00> : vector<8x1xf32>
    %25 = vector.multi_reduction <add>, %16, %cst_18 [1] : vector<8x8x1xf32> to vector<8x1xf32>
    %26 = vector.shape_cast %25 : vector<8x1xf32> to vector<8x1x1xf32>
    %cst_19 = arith.constant dense<0.000000e+00> : vector<8x1xf32>
    %27 = vector.multi_reduction <add>, %24, %cst_19 [1] : vector<8x8x1xf32> to vector<8x1xf32>
    %28 = vector.shape_cast %27 : vector<8x1xf32> to vector<8x1x1xf32>
    %cst_20 = arith.constant 2.048000e+03 : f32
    %29 = vector.broadcast %cst_20 : f32 to vector<8x1x1xf32>
    %30 = arith.divf %26, %29 : vector<8x1x1xf32>
    %cst_21 = arith.constant 2.048000e+03 : f32
    %31 = vector.broadcast %cst_21 : f32 to vector<8x1x1xf32>
    %32 = arith.divf %28, %31 : vector<8x1x1xf32>
    %33 = arith.mulf %30, %30 : vector<8x1x1xf32>
    %34 = arith.subf %32, %33 : vector<8x1x1xf32>
    %cst_22 = arith.constant 0.000000e+00 : f32
    %35 = vector.broadcast %cst_22 : f32 to vector<8x1x1xf32>
    %36 = arith.maximumf %34, %35 : vector<8x1x1xf32>
    %cst_23 = arith.constant 9.99999974E-6 : f32
    %37 = vector.broadcast %cst_23 : f32 to vector<8x1x1xf32>
    %38 = arith.addf %36, %37 : vector<8x1x1xf32>
    %39 = math.rsqrt %38 : vector<8x1x1xf32>
    %40 = vector.broadcast %39 : vector<8x1x1xf32> to vector<8x8x1xf32>
    %41 = arith.mulf %40, %2 : vector<8x8x1xf32>
    %42 = vector.broadcast %30 : vector<8x1x1xf32> to vector<8x8x1xf32>
    %43 = arith.subf %1, %42 : vector<8x8x1xf32>
    %44 = arith.mulf %43, %41 : vector<8x8x1xf32>
    %45 = arith.addf %3, %44 : vector<8x8x1xf32>
    %46 = vector.broadcast %41 : vector<8x8x1xf32> to vector<8x8x256xf32>
    %47 = arith.mulf %8, %46 : vector<8x8x256xf32>
    %48 = vector.broadcast %45 : vector<8x8x1xf32> to vector<8x8x256xf32>
    %49 = arith.addf %47, %48 : vector<8x8x256xf32>
    %50 = vector.shape_cast %49 : vector<8x8x256xf32> to vector<64x256xf32>
    %c0_24 = arith.constant 0 : index
    %c0_25 = arith.constant 0 : index
    %c0_26 = arith.constant 0 : index
    %51 = vector.load %arg6[%c0_24, %c0_25, %c0_26] : memref<1x64x256xf32, #tpu.memory_space<vmem>>, vector<1x64x256xf32>
    %52 = vector.shape_cast %51 : vector<1x64x256xf32> to vector<64x256xf32>
    %53 = vector.shape_cast %50 : vector<64x256xf32> to vector<1x64x256xf32>
    tpu.vector_store %arg6[%c0_24, %c0_25, %c0_26], %53 {strides = array<i32>} : memref<1x64x256xf32, #tpu.memory_space<vmem>>, vector<1x64x256xf32>,
    return
  }
  func.func @transform_0(%arg0: i32) -> (i32, i32, i32) {
    %c0_i32 = arith.constant 0 : i32
    %c0_i32_0 = arith.constant 0 : i32
    %c0_i32_1 = arith.constant 0 : i32
    return %arg0, %c0_i32, %c0_i32_0 : i32, i32, i32
  }
  func.func @transform_1(%arg0: i32) -> (i32, i32) {
    %c0_i32 = arith.constant 0 : i32
    %c0_i32_0 = arith.constant 0 : i32
    %c0_i32_1 = arith.constant 0 : i32
    return %c0_i32, %c0_i32_0 : i32, i32
  }
  func.func @transform_2(%arg0: i32) -> (i32, i32, i32) {
    %c0_i32 = arith.constant 0 : i32
    %c0_i32_0 = arith.constant 0 : i32
    %c0_i32_1 = arith.constant 0 : i32
    %c0_i32_2 = arith.constant 0 : i32
    return %c0_i32, %c0_i32_0, %c0_i32_1 : i32, i32, i32
  }
  func.func @transform_3(%arg0: i32) -> (i32, i32, i32) {
    %c0_i32 = arith.constant 0 : i32
    %c0_i32_0 = arith.constant 0 : i32
    %c0_i32_1 = arith.constant 0 : i32
    %c0_i32_2 = arith.constant 0 : i32
    return %c0_i32, %c0_i32_0, %c0_i32_1 : i32, i32, i32
  }
  func.func @transform_4(%arg0: i32) -> (i32, i32, i32) {
    %c0_i32 = arith.constant 0 : i32
    %c0_i32_0 = arith.constant 0 : i32
    %c0_i32_1 = arith.constant 0 : i32
    %c0_i32_2 = arith.constant 0 : i32
    return %c0_i32, %c0_i32_0, %c0_i32_1 : i32, i32, i32
  }
  func.func @transform_5(%arg0: i32) -> (i32, i32, i32) {
    %c0_i32 = arith.constant 0 : i32
    %c0_i32_0 = arith.constant 0 : i32
    %c0_i32_1 = arith.constant 0 : i32
    return %arg0, %c0_i32, %c0_i32_0 : i32, i32, i32
  }
}

</mosaic_0001>

<bundles_post_ra>
// kernel: tpu_custom_call.1
= control target key start
LH: loop header
LB: loop body
LE: loop exit
PB: predicated region body
PF: predicated region fallthrough
CT: control target
= control target key end

     0   :  { %10 = vsyncpa [#allocation3], 0  ;;  %s1709_s0 = inlined_call_operand.vmem [shape: f32[2,32,256], index: 0, kind: input, shape index: {}]   ;;  %s1710_s1 = inlined_call_operand.vmem [shape: bf16[64,32], index: 1, kind: input, shape index: {}]   ;;  %s1711_s2 = inlined_call_operand.vmem [shape: f32[8,8,1], index: 2, kind: input, shape index: {}]   ;;  %s1712_s3 = inlined_call_operand.vmem [shape: f32[8,8,1], index: 3, kind: input, shape index: {}]   ;;  %s1713_s4 = inlined_call_operand.vmem [shape: f32[8,8,1], index: 4, kind: input, shape index: {}]   ;;  %s1714_s5 = inlined_call_operand.hbm [shape: f32[2,64,256], index: 5, kind: output, shape index: {}]  }
   0x1   :  { %12 = vsyncpa [#allocation3 + $0x1], 0  ;;  %s1181_s18 = smov 0   ;;  %s1183_s19 = smov 0  }
   0x2   :  { %s1185_s20 = smov 0   ;;  %s1187_s21 = smov 0  }
   0x3 LB: > { %s1202_s22 = sadd.s32 4294967295, %s1145_s21   ;;  %s973_s23 = sadd.s32 4294967294, %s1145_s21   ;;  %s1145_s21 = sphi %s1187_s21, %s1735_s21   ;;  %s1141_s20 = sphi %s1185_s20, %s1734_s20   ;;  %s1137_s19 = sphi %s1183_s19, %s1733_s19   ;;  %s1133_s18 = sphi %s1181_s18, %s1732_s18  }
   0x4   : > { %s1206_s24 = sadd.s32 1, %s1145_s21   ;;  %s135_s25 = sadd.s32 1, %s1141_s20 }
   0x5   : > { %s132_s26 = ssub.s32 %s1145_s21, %s1206_s24  ;;  %p145_p0 = scmp.ne.s32.totalorder %s1141_s20, %s1137_s19 }
   0x6   : > { %p133_p1 = scmp.eq.s32.totalorder %s132_s26, 0  ;;  %p146_p2 = scmp.eq.s32.totalorder %s1202_s22, 1 }
   0x7   : > { %p151_p3 = scmp.ne.s32.totalorder %s1137_s19, %s1133_s18  ;;  %p152_p4 = scmp.eq.s32.totalorder %s973_s23, 1 }
   0x8   : > { %s1217_s27 = scalar_select %p133_p1, %s1141_s20, %s135_s25  }
   0x9   : > { %p1219_p5 = por %p146_p2, %p145_p0  ;;  %p1223_p6 = por %p152_p4, %p151_p3 }
   0xa   : > { %p976_p7 = scmp.ge.s32.totalorder %s1145_s21, 1  ;;  %p190_p8 = scmp.lt.s32.totalorder %s1145_s21, 3 }
   0xc   : > { %p191_p9 = pnand %p976_p7, %p190_p8 }
   0xe   : > { %194 = sbr.rel (%p191_p9) target bundleno = 504 (0x1f8), region = 40 }
  0x13   : > { %p218_p10 = scmp.lt.s32.totalorder %s1202_s22, 1  ;;  %v1010_v12 = vld [vmem:[%s1710_s1] sm:$0xff]  ;;  %v1012_v13 = vld [vmem:[%s1710_s1 + $0x10] sm:$0xff]  ;;  %vm288_vm0 = vcmask 261120   ;;  %v1011_v14 = vld [vmem:[%s1710_s1 + $0x8] sm:$0xff]  ;;  %vm487_vm1 = vcmask 7168  }
  0x14   : > { %v1013_v15 = vld [vmem:[%s1710_s1 + $0x18] sm:$0xff]  ;;  %s215_s23 = sand.u32 1, %s1137_s19   ;;  %s1103_s15 = scalar_lea.hbm %s1714_s5, 256 }
  0x15   : > { %s219_s30 = scalar_select %p218_p10, %s1202_s22, 1 }
  0x16   : > { %s977_s25 = sshll.u32 %s215_s23, 7  ;;  %s896_s10 = scalar_lea.sflag [#allocation3], %s215_s23 }
  0x17   : > { %s1009_s6 = sshll.u32 %s219_s30, 6  ;;  %s1643_s26 = scalar_lea.vmem [#allocation2], %s977_s25 }
  0x18   : > { %s222_s9 = scalar_lea.vmem %s1709_s0, %s1009_s6  ;;  %s1014_s30 = sshll.u32 %s1202_s22, 7 }
  0x19   : > { %v260_v0 = vld [vmem:[%s222_s9 + $0x20] sm:$0xff]  ;;  %v262_v1 = vld [vmem:[%s222_s9 + $0x30] sm:$0xff]  ;;  %v261_v2 = vld [vmem:[%s222_s9 + $0x28] sm:$0xff]  ;;  %s907_s8 = scalar_lea.hbm %s1714_s5, %s1014_s30  ;;  %s908_s22 = sshll.u32 %s1643_s26, 4  ;;  %s909_s22 = int_to_ptr.vmem [resolvable:$true] %s908_s22 }
  0x1a   : > { %v266_v3 = vpack.c.bf16 %v262_v1, %v260_v0  ;;  %v263_v4 = vld [vmem:[%s222_s9 + $0x38] sm:$0xff]  ;;  %v256_v5 = vld [vmem:[%s222_s9] sm:$0xff]  ;;  %v258_v6 = vld [vmem:[%s222_s9 + $0x10] sm:$0xff]  ;;  %v1147_v0 = vmov 2048.0  }
  0x1b   : > { %v267_v7 = vpack.c.bf16 %v263_v4, %v261_v2  ;;  %v257_v8 = vld [vmem:[%s222_s9 + $0x8] sm:$0xff]  ;;  %v259_v9 = vld [vmem:[%s222_s9 + $0x18] sm:$0xff]  ;;  %v264_v10 = vpack.c.bf16 %v258_v6, %v256_v5  ;;  %1065 = vrcp.f32 %v1147_v0  ;;  %v1378_v0 = vld [vmem:[%s1711_s2 + $0x30] sm:$0xff]  ;;  %s910_s9 = sshll.u32 %s907_s8, 4  ;;  %s911_s9 = int_to_ptr.hbm [resolvable:$true] %s910_s9 }
  0x1c   : > { %307 = vmatpush.bf16.msra.mxu0 %v266_v3  ;;  %1015 = vmatpush.bf16.msra.mxu2 %v266_v3  ;;  %v265_v11 = vpack.c.bf16 %v259_v9, %v257_v8  ;;  %v1329_v3 = vld [vmem:[%s1711_s2] sm:$0xff]  ;;  %s1097_s11 = sshra.s32 %s911_s9, 4  ;;  %s1098_s11 = int_to_ptr.hbm [resolvable:$true] %s1097_s11 }
  0x1d   : > { %336 = vmatpush.bf16.msra.mxu1 %v267_v7  ;;  %1017 = vmatpush.bf16.msra.mxu3 %v267_v7  ;;  %v423_v4 = vmul.f32 256.0, %v1329_v3  ;;  %v439_v5 = vmul.f32 2.0, %v1329_v3  ;;  %v463_v7 = vmul.f32 %v1329_v3, %v1329_v3  ;;  %s1099_s12 = scalar_lea.hbm %s1098_s11, 128  ;;  %p1104_p0 = scmp.lt.s32.totalorder %s1098_s11, %s1714_s5 }
  0x1e   : > { %p1100_p11 = scmp.ne.s32.totalorder %s1098_s11, %s1099_s12  ;;  %p1105_p1 = scmp.lt.s32.totalorder %s1103_s15, %s1099_s12 }
  0x20   : > { %308 = vmatpush.bf16.msra.mxu0 %v264_v10  ;;  %1016 = vmatpush.bf16.msra.mxu2 %v264_v10  ;;  %p1101_p12 = pnand %p1100_p11, %p1219_p5  ;;  %p1106_p2 = por %p1105_p1, %p1104_p0 }
  0x21   : > { %337 = vmatpush.bf16.msra.mxu1 %v265_v11  ;;  %1018 = vmatpush.bf16.msra.mxu3 %v265_v11  ;;  %v1066_v1 = vpop.eup %1065 }
  0x22   : > { %v601_v2 = vmul.f32 2048.0, %v1066_v1  ;;  %vm605_vm2 = vweird.f32 %v1066_v1  ;;  %p1102_p13 = pneg %p1101_p12 }
  0x23   : > { %996 = vmatmul.msk.bf16.vlgmr.msra.gmra.mxu0 %vm288_vm0, %v1010_v12  ;;  %998 = vmatmul.msk.bf16.vlgmr.msra.gmra.mxu2 %vm288_vm0, %v1012_v13 }
  0x24   : > { %1000 = vmatmul.msk.bf16.vlgmr.msra.gmra.mxu1 %vm288_vm0, %v1010_v12  ;;  %1002 = vmatmul.msk.bf16.vlgmr.msra.gmra.mxu3 %vm288_vm0, %v1012_v13  ;;  %v602_v6 = vsub.f32 1.0, %v601_v2  ;;  %v471_v12 = vmul.f32 256.0, %v463_v7  ;;  %p1107_p3 = pnand %p1106_p2, %p1102_p13 }
  0x26   : > { %v603_v9 = vmul.f32 %v1066_v1, %v602_v6 }
  0x33   : > { %997 = vmatmul.msk.bf16.gmra.mxu0 %vm288_vm0, %v1011_v14  ;;  %999 = vmatmul.msk.bf16.gmra.mxu2 %vm288_vm0, %v1013_v15 }
  0x34   : > { %1001 = vmatmul.msk.bf16.gmra.mxu1 %vm288_vm0, %v1011_v14  ;;  %1003 = vmatmul.msk.bf16.gmra.mxu3 %vm288_vm0, %v1013_v15  ;;  %v1338_v14 = vld [vmem:[%s1711_s2 + $0x8] sm:$0xff] }
  0xa0   : > { %v1246_v16 = vpop.f32.mrf.mxu0 }
  0xa1   : > { %v1248_v17 = vpop.f32.mrf.mxu1  ;;  %v383_v18 = vmul.f32 %v1246_v16, %v1246_v16 }
  0xa2   : > { %v359_v19 = vadd.f32 %v1248_v17, %v1246_v16  ;;  %v384_v20 = vmul.f32 %v1248_v17, %v1248_v17 }
  0xa4   : > { %360 = vadd.xlane.f32.xlu0 %v359_v19  ;;  %v399_v21 = vadd.f32 %v384_v20, %v383_v18  ;;  %v1344_v20 = vld [vmem:[%s1711_s2 + $0x20] sm:$0xff] }
  0xa6   : > { %400 = vadd.xlane.f32.xlu2 %v399_v21  ;;  %v1256_v22 = vpop.f32.mrf.mxu2  ;;  %v604_v21 = vadd.f32 %v1066_v1, %v603_v9 }
  0xa7   : > { %v1258_v23 = vpop.f32.mrf.mxu3  ;;  %v391_v28 = vmul.f32 %v1256_v22, %v1256_v22 }
  0xa8   : > { %v1260_v24 = vpop.f32.mrf.mxu0  ;;  %v371_v27 = vadd.f32 %v1258_v23, %v1256_v22  ;;  %v392_v29 = vmul.f32 %v1258_v23, %v1258_v23 }
  0xa9   : > { %v1262_v25 = vpop.f32.mrf.mxu1  ;;  %v385_v37 = vmul.f32 %v1260_v24, %v1260_v24 }
  0xaa   : > { %v362_v26 = vadd.f32 %v1262_v25, %v1260_v24  ;;  %v411_v33 = vadd.f32 %v392_v29, %v391_v28  ;;  %v386_v38 = vmul.f32 %v1262_v25, %v1262_v25 }
  0xac   : > { %363 = vadd.xlane.f32.xlu0 %v362_v26  ;;  %v402_v47 = vadd.f32 %v386_v38, %v385_v37 }
  0xae   : > { %372 = vadd.xlane.f32.xlu2 %v371_v27  ;;  %v1272_v30 = vpop.f32.mrf.mxu2  ;;  %v424_v27 = vmul.f32 256.0, %v1338_v14 }
  0xaf   : > { %1721 = vst [vmem:[#allocation5_spill] sm:$0xff] %v1272_v30  ;;  %v1274_v31 = vpop.f32.mrf.mxu3  ;;  %v393_v61 = vmul.f32 %v1272_v30, %v1272_v30 }
  0xb0   : > { %1722 = vst [vmem:[#allocation6_spill] sm:$0xff] %v1274_v31  ;;  %v1276_v32 = vpop.f32.mrf.mxu0  ;;  %v374_v36 = vadd.f32 %v1274_v31, %v1272_v30  ;;  %v394_v62 = vmul.f32 %v1274_v31, %v1274_v31 }
  0xb1   : > { %v1278_v34 = vpop.f32.mrf.mxu1  ;;  %v387_v39 = vmul.f32 %v1276_v32, %v1276_v32 }
  0xb2   : > { %v365_v35 = vadd.f32 %v1278_v34, %v1276_v32  ;;  %v388_v40 = vmul.f32 %v1278_v34, %v1278_v34  ;;  %v414_v63 = vadd.f32 %v394_v62, %v393_v61 }
  0xb4   : > { %412 = vadd.xlane.f32.xlu0 %v411_v33  ;;  %366 = vadd.xlane.f32.xlu1 %v365_v35  ;;  %v405_v48 = vadd.f32 %v388_v40, %v387_v39  ;;  %v427_v33 = vmul.f32 256.0, %v1344_v20  ;;  %v1352_v35 = vld [vmem:[%s1711_s2 + $0x10] sm:$0xff]  ;;  %v467_v39 = vmul.f32 %v1344_v20, %v1344_v20  ;;  %v1358_v40 = vsel %vm605_vm2, %v1066_v1, %v604_v21 }
  0xb6   : > { %375 = vadd.xlane.f32.xlu2 %v374_v36  ;;  %v1294_v42 = vpop.f32.mrf.mxu2 }
  0xb7   : > { %1723 = vst [vmem:[#allocation7_spill] sm:$0xff] %v1294_v42  ;;  %v1300_v45 = vpop.f32.mrf.mxu3  ;;  %v395_v50 = vmul.f32 %v1294_v42, %v1294_v42 }
  0xb8   : > { %v1292_v41 = vpop.f32.mrf.mxu0  ;;  %1724 = vst [vmem:[#allocation8_spill] sm:$0xff] %v1300_v45  ;;  %v396_v51 = vmul.f32 %v1300_v45, %v1300_v45  ;;  %v377_v52 = vadd.f32 %v1300_v45, %v1294_v42 }
  0xb9   : > { %v389_v43 = vmul.f32 %v1292_v41, %v1292_v41  ;;  %v1298_v44 = vpop.f32.mrf.mxu1 }
  0xba   : > { %v390_v46 = vmul.f32 %v1298_v44, %v1298_v44  ;;  %v368_v53 = vadd.f32 %v1298_v44, %v1292_v41  ;;  %v417_v54 = vadd.f32 %v396_v51, %v395_v50  ;;  %v425_v51 = vmul.f32 256.0, %v1352_v35 }
  0xbc   : > { %403 = vadd.xlane.f32.xlu0 %v402_v47  ;;  %406 = vadd.xlane.f32.xlu1 %v405_v48  ;;  %v408_v49 = vadd.f32 %v390_v46, %v389_v43  ;;  %v440_v43 = vmul.f32 2.0, %v1338_v14  ;;  %v443_v47 = vmul.f32 2.0, %v1344_v20 }
  0xbe   : > { %409 = vadd.xlane.f32.xlu2 %v408_v49  ;;  %v1312_v55 = vpop.f32.mrf.mxu2 }
  0xbf   : > { %v1314_v56 = vpop.f32.mrf.mxu3  ;;  %v397_v57 = vmul.f32 %v1312_v55, %v1312_v55 }
  0xc0   : > { %v398_v58 = vmul.f32 %v1314_v56, %v1314_v56  ;;  %v380_v60 = vadd.f32 %v1314_v56, %v1312_v55 }
  0xc2   : > { %v420_v59 = vadd.f32 %v398_v58, %v397_v57  ;;  %v464_v58 = vmul.f32 %v1338_v14, %v1338_v14 }
  0xc4   : > { %378 = vadd.xlane.f32.xlu0 %v377_v52  ;;  %369 = vadd.xlane.f32.xlu1 %v368_v53  ;;  %v441_v52 = vmul.f32 2.0, %v1352_v35  ;;  %v1368_v53 = vld [vmem:[%s1711_s2 + $0x28] sm:$0xff] }
  0xc6   : > { %418 = vadd.xlane.f32.xlu2 %v417_v54 }
  0xcc   : > { %421 = vadd.xlane.f32.xlu0 %v420_v59  ;;  %381 = vadd.xlane.f32.xlu1 %v380_v60  ;;  %v465_v59 = vmul.f32 %v1352_v35, %v1352_v35 }
  0xd4   : > { %415 = vadd.xlane.f32.xlu1 %v414_v63  ;;  %v475_v63 = vmul.f32 256.0, %v467_v39 }
 0x117   : > { %v361_v8 = vpop.xlane.xlu0 %360 }
 0x118   : > { %v431_v10 = vadd.f32 %v423_v4, %v361_v8  ;;  %v447_v11 = vmul.f32 %v439_v5, %v361_v8  ;;  %v428_v4 = vmul.f32 256.0, %v1368_v53  ;;  %v1383_v5 = vmul.f32 2.0, %v1368_v53 }
 0x119   : > { %v401_v13 = vpop.xlane.xlu2 %400 }
 0x11a   : > { %v488_v15 = vsel %vm487_vm1, %v431_v10, 0.0  ;;  %v455_v18 = vadd.f32 %v447_v11, %v401_v13  ;;  %v1388_v10 = vld [vmem:[%s1711_s2 + $0x18] sm:$0xff]  ;;  %v472_v11 = vmul.f32 256.0, %v464_v58  ;;  %v1391_v13 = vmul.f32 256.0, %v1378_v0 }
 0x11b   : > { %v489_v19 = vrot.slane %v488_v15, 4 }
 0x11c   : > { %v479_v26 = vadd.f32 %v471_v12, %v455_v18  ;;  %v473_v12 = vmul.f32 256.0, %v465_v59 }
 0x11d   : > { %v490_v28 = vadd.f32 %v489_v19, %v488_v15  ;;  %v1394_v15 = vmul.f32 2.0, %v1378_v0 }
 0x11e   : > { %v544_v29 = vsel %vm487_vm1, %v479_v26, 0.0 }
 0x11f   : > { %v491_v36 = vrot.slane %v490_v28, 2  ;;  %v545_v37 = vrot.slane %v544_v29, 4  ;;  %v1354_v38 = vpop.xlane.xlu0 %363 }
 0x120   : > { %v432_v46 = vadd.f32 %v424_v27, %v1354_v38 }
 0x121   : > { %v492_v48 = vadd.f32 %v491_v36, %v490_v28  ;;  %v546_v49 = vadd.f32 %v545_v37, %v544_v29  ;;  %v373_v50 = vpop.xlane.xlu2 %372  ;;  %v1400_v36 = vmul.f32 256.0, %v1388_v10 }
 0x122   : > { %v495_v54 = vsel %vm487_vm1, %v432_v46, 0.0  ;;  %v435_v57 = vadd.f32 %v427_v33, %v373_v50  ;;  %v451_v1 = vmul.f32 %v443_v47, %v373_v50 }
 0x123   : > { %v493_v60 = vrot.slane %v492_v48, 1  ;;  %v547_v61 = vrot.slane %v546_v49, 2  ;;  %v496_v62 = vrot.slane %v495_v54, 4 }
 0x124   : > { %v516_v2 = vsel %vm487_vm1, %v435_v57, 0.0 }
 0x125   : > { %v494_v6 = vadd.f32 %v493_v60, %v492_v48  ;;  %v548_v7 = vadd.f32 %v547_v61, %v546_v49  ;;  %v497_v8 = vadd.f32 %v496_v62, %v495_v54  ;;  %v517_v9 = vrot.slane %v516_v2, 4 }
 0x126   : > { %v466_v48 = vmul.f32 %v1388_v10, %v1388_v10  ;;  %v1148_v49 = vmov 0  }
 0x127   : > { %v1397_v18 = vmul.f32 %v1358_v40, %v494_v6  ;;  %v549_v19 = vrot.slane %v548_v7, 1  ;;  %v498_v21 = vrot.slane %v497_v8, 2  ;;  %v518_v26 = vadd.f32 %v517_v9, %v516_v2  ;;  %v413_v27 = vpop.xlane.xlu0 %412  ;;  %v367_v28 = vpop.xlane.xlu1 %366  ;;  %1062 = vset.pattern.permute.xlu1 %v1148_v49  ;;  %1064 = vset.pattern.permute.xlu0 %v1148_v49 }
 0x128   : > { %v459_v29 = vadd.f32 %v451_v1, %v413_v27  ;;  %v433_v33 = vadd.f32 %v425_v51, %v367_v28  ;;  %1063 = vset.pattern.permute.xlu2 %v1148_v49  ;;  %v1411_v2 = vmul.f32 2.0, %v1388_v10  ;;  %v469_v6 = vmul.f32 %v1378_v0, %v1378_v0  ;;  %v1419_v27 = vld [vmem:[%s1711_s2 + $0x38] sm:$0xff] }
 0x129   : > { %v550_v37 = vadd.f32 %v549_v19, %v548_v7  ;;  %v499_v39 = vadd.f32 %v498_v21, %v497_v8  ;;  %v519_v46 = vrot.slane %v518_v26, 2  ;;  %v376_v47 = vpop.xlane.xlu2 %375  ;;  %v623_v50 = vmul.f32 %v1397_v18, %v1397_v18 }
 0x12a   : > { %v483_v54 = vadd.f32 %v475_v63, %v459_v29  ;;  %v502_v57 = vsel %vm487_vm1, %v433_v33, 0.0  ;;  %v436_v51 = vadd.f32 %v428_v4, %v376_v47  ;;  %v448_v7 = vmul.f32 %v440_v43, %v1354_v38 }
 0x12b   : > { %v615_v58 = vmul.f32 %v1358_v40, %v550_v37  ;;  %v500_v59 = vrot.slane %v499_v39, 1  ;;  %v520_v60 = vadd.f32 %v519_v46, %v518_v26  ;;  %v503_v61 = vrot.slane %v502_v57, 4 }
 0x12c   : > { %v572_v62 = vsel %vm487_vm1, %v483_v54, 0.0  ;;  %v523_v1 = vsel %vm487_vm1, %v436_v51, 0.0  ;;  %v449_v19 = vmul.f32 %v441_v52, %v367_v28  ;;  %v1421_v46 = vmul.f32 256.0, %v466_v48 }
 0x12d   : > { %v631_v63 = vsub.f32 %v615_v58, %v623_v50  ;;  %v521_v4 = vrot.slane %v520_v60, 1  ;;  %v573_v8 = vrot.slane %v572_v62, 4  ;;  %v501_v9 = vadd.f32 %v500_v59, %v499_v39 }
 0x12e   : > { %v504_v21 = vadd.f32 %v503_v61, %v502_v57  ;;  %v524_v26 = vrot.slane %v523_v1, 4  ;;  %v470_v49 = vmul.f32 %v1419_v27, %v1419_v27  ;;  %v477_v51 = vmul.f32 256.0, %v469_v6 }
 0x12f   : > { %v574_v29 = vadd.f32 %v573_v8, %v572_v62  ;;  %v404_v33 = vpop.xlane.xlu0 %403  ;;  %v407_v37 = vpop.xlane.xlu1 %406  ;;  %v639_v38 = vmax.f32 %v631_v63, 0.0  ;;  %v522_v28 = vadd.f32 %v521_v4, %v520_v60  ;;  %v1426_v58 = vmul.f32 256.0, %v1419_v27 }
 0x130   : > { %v505_v43 = vrot.slane %v504_v21, 2  ;;  %v525_v50 = vadd.f32 %v524_v26, %v523_v1  ;;  %v456_v39 = vadd.f32 %v448_v7, %v404_v33  ;;  %v457_v52 = vadd.f32 %v449_v19, %v407_v37 }
 0x131   : > { %v575_v54 = vrot.slane %v574_v29, 2  ;;  %v410_v57 = vpop.xlane.xlu2 %409  ;;  %v1429_v59 = vmul.f32 %v1358_v40, %v501_v9  ;;  %v446_v63 = vmul.f32 2.0, %v1419_v27  ;;  %v1432_v1 = vmul.f32 256.0, %v470_v49 }
 0x132   : > { %v506_v48 = vadd.f32 %v505_v43, %v504_v21  ;;  %v480_v61 = vadd.f32 %v472_v11, %v456_v39  ;;  %v481_v62 = vadd.f32 %v473_v12, %v457_v52  ;;  %v526_v31 = vrot.slane %v525_v50, 2 }
 0x133   : > { %v576_v8 = vadd.f32 %v575_v54, %v574_v29  ;;  %v1436_v4 = vadd.f32 1e-05, %v639_v38  ;;  %v1439_v19 = vmul.f32 %v1358_v40, %v522_v28  ;;  %v1443_v12 = vmul.f32 %v1429_v59, %v1429_v59 }
 0x134   : > { %v507_v7 = vrot.slane %v506_v48, 1  ;;  %v551_v60 = vsel %vm487_vm1, %v480_v61, 0.0  ;;  %v558_v6 = vsel %vm487_vm1, %v481_v62, 0.0  ;;  %v1446_v29 = vmul.f32 %v1383_v5, %v376_v47 }
 0x135   : > { %v577_v9 = vrot.slane %v576_v8, 1  ;;  %v552_v21 = vrot.slane %v551_v60, 4  ;;  %v559_v11 = vrot.slane %v558_v6, 4  ;;  %v1450_v49 = vadd.f32 %v526_v31, %v525_v50 }
 0x136   : > { %v508_v26 = vadd.f32 %v507_v7, %v506_v48  ;;  %1067 = vrsqrt.f32 %v1436_v4  ;;  %v468_v5 = vmul.f32 %v1368_v53, %v1368_v53  ;;  %v627_v47 = vmul.f32 %v1439_v19, %v1439_v19 }
 0x137   : > { %v578_v37 = vadd.f32 %v577_v9, %v576_v8  ;;  %v553_v38 = vadd.f32 %v552_v21, %v551_v60  ;;  %v560_v43 = vadd.f32 %v559_v11, %v558_v6  ;;  %v379_v39 = vpop.xlane.xlu0 %378  ;;  %v370_v52 = vpop.xlane.xlu1 %369  ;;  %v528_v7 = vrot.slane %v1450_v49, 1 }
 0x138   : > { %v437_v28 = vadd.f32 %v1391_v13, %v379_v39  ;;  %v453_v54 = vmul.f32 %v1394_v15, %v379_v39  ;;  %v434_v31 = vadd.f32 %v1400_v36, %v370_v52  ;;  %v1462_v8 = vmul.f32 %v1358_v40, %v508_v26 }
 0x139   : > { %v554_v48 = vrot.slane %v553_v38, 2  ;;  %v561_v61 = vrot.slane %v560_v43, 2  ;;  %v419_v50 = vpop.xlane.xlu2 %418  ;;  %v619_v62 = vmul.f32 %v1358_v40, %v578_v37  ;;  %v450_v15 = vmul.f32 %v1411_v2, %v370_v52 }
 0x13a   : > { %v530_v13 = vsel %vm487_vm1, %v437_v28, 0.0  ;;  %v509_v11 = vsel %vm487_vm1, %v434_v31, 0.0  ;;  %v461_v39 = vadd.f32 %v453_v54, %v419_v50  ;;  %v476_v36 = vmul.f32 256.0, %v468_v5 }
 0x13b   : > { %v555_v60 = vadd.f32 %v554_v48, %v553_v38  ;;  %v562_v6 = vadd.f32 %v561_v61, %v560_v43  ;;  %v531_v9 = vrot.slane %v530_v13, 4  ;;  %v458_v21 = vadd.f32 %v450_v15, %v410_v57 }
 0x13c   : > { %v510_v45 = vrot.slane %v509_v11, 4  ;;  %v1468_v26 = vpop.eup %1067  ;;  %v635_v42 = vsub.f32 %v619_v62, %v627_v47  ;;  %v1472_v2 = vmul.f32 %v1462_v8, %v1462_v8  ;;  %v485_v43 = vadd.f32 %v477_v51, %v461_v39 }
 0x13d   : > { %v556_v33 = vrot.slane %v555_v60, 1  ;;  %v563_v30 = vrot.slane %v562_v6, 1  ;;  %v532_v37 = vadd.f32 %v531_v9, %v530_v13  ;;  %v482_v38 = vadd.f32 %v1421_v46, %v458_v21 }
 0x13e   : > { %v511_v48 = vadd.f32 %v510_v45, %v509_v11  ;;  %v586_v61 = vsel %vm487_vm1, %v485_v43, 0.0  ;;  %v656_v46 = vmul.f32 %v1468_v26, %v1436_v4  ;;  %vm661_vm3 = vweird.f32 %v1436_v4 }
 0x13f   : > { %v557_v52 = vadd.f32 %v556_v33, %v555_v60  ;;  %v564_v57 = vadd.f32 %v563_v30, %v562_v6  ;;  %v533_v28 = vrot.slane %v532_v37, 2  ;;  %v382_v54 = vpop.xlane.xlu1 %381  ;;  %v565_v5 = vsel %vm487_vm1, %v482_v38, 0.0  ;;  %v422_v15 = vpop.xlane.xlu0 %421 }
 0x140   : > { %v438_v31 = vadd.f32 %v1426_v58, %v382_v54  ;;  %v454_v50 = vmul.f32 %v446_v63, %v382_v54  ;;  %v512_v13 = vrot.slane %v511_v48, 2  ;;  %v566_v51 = vrot.slane %v565_v5, 4 }
 0x141   : > { %v616_v47 = vmul.f32 %v1358_v40, %v557_v52  ;;  %v534_v62 = vadd.f32 %v533_v28, %v532_v37  ;;  %v587_v30 = vrot.slane %v586_v61, 4  ;;  %v617_v60 = vmul.f32 %v1358_v40, %v564_v57 }
 0x142   : > { %v462_v33 = vadd.f32 %v454_v50, %v422_v15  ;;  %v537_v45 = vsel %vm487_vm1, %v438_v31, 0.0  ;;  %v513_v9 = vadd.f32 %v512_v13, %v511_v48  ;;  %vm662_vm4 = vweird.f32 %v1468_v26 }
 0x143   : > { %v535_v6 = vrot.slane %v534_v62, 1  ;;  %v567_v58 = vadd.f32 %v566_v51, %v565_v5  ;;  %v588_v63 = vadd.f32 %v587_v30, %v586_v61  ;;  %v538_v11 = vrot.slane %v537_v45, 4  ;;  %vm663_vm5 = vmor %vm661_vm3, %vm662_vm4 }
 0x144   : > { %v486_v21 = vadd.f32 %v1432_v1, %v462_v33  ;;  %v632_v39 = vsub.f32 %v616_v47, %v1443_v12  ;;  %v657_v38 = vmul.f32 %v1468_v26, %v656_v46  ;;  %v643_v43 = vmax.f32 %v635_v42, 0.0 }
 0x145   : > { %v536_v37 = vadd.f32 %v535_v6, %v534_v62  ;;  %v568_v52 = vrot.slane %v567_v58, 2  ;;  %v589_v28 = vrot.slane %v588_v63, 2  ;;  %v539_v57 = vadd.f32 %v538_v11, %v537_v45  ;;  %v240_v6 = vld [vmem:[%s1712_s3] sm:$0xff] }
 0x146   : > { %v593_v48 = vsel %vm487_vm1, %v486_v21, 0.0  ;;  %v633_v54 = vsub.f32 %v617_v60, %v1472_v2  ;;  %v514_v31 = vrot.slane %v513_v9, 1  ;;  %v658_v5 = vmul.f32 0.5, %v657_v38 }
 0x147   : > { %v594_v50 = vrot.slane %v593_v48, 4  ;;  %v416_v61 = vpop.xlane.xlu1 %415  ;;  %v569_v13 = vadd.f32 %v568_v52, %v567_v58  ;;  %v590_v1 = vadd.f32 %v589_v28, %v588_v63  ;;  %v540_v15 = vrot.slane %v539_v57, 2 }
 0x148   : > { %v460_v12 = vadd.f32 %v1446_v29, %v416_v61  ;;  %v1492_v47 = vmul.f32 %v1358_v40, %v536_v37  ;;  %v659_v62 = vsub.f32 1.5, %v658_v5  ;;  %v1494_v46 = vadd.f32 1e-05, %v643_v43 }
 0x149   : > { %v595_v42 = vadd.f32 %v594_v50, %v593_v48  ;;  %v570_v51 = vrot.slane %v569_v13, 1  ;;  %v591_v30 = vrot.slane %v590_v1, 1  ;;  %v541_v33 = vadd.f32 %v540_v15, %v539_v57 }
 0x14a   : > { %v484_v2 = vadd.f32 %v476_v36, %v460_v12  ;;  %v515_v45 = vadd.f32 %v514_v31, %v513_v9  ;;  %v660_v58 = vmul.f32 %v1468_v26, %v659_v62  ;;  %1069 = vrsqrt.f32 %v1494_v46 }
 0x14b   : > { %v596_v60 = vrot.slane %v595_v42, 2  ;;  %v571_v29 = vadd.f32 %v570_v51, %v569_v13  ;;  %v592_v63 = vadd.f32 %v591_v30, %v590_v1  ;;  %v542_v21 = vrot.slane %v541_v33, 1  ;;  %v248_v30 = vld [vmem:[%s1713_s4] sm:$0xff] }
 0x14c   : > { %v579_v36 = vsel %vm487_vm1, %v484_v2, 0.0  ;;  %v664_v11 = vsel %vm663_vm5, %v1468_v26, %v660_v58  ;;  %v640_v38 = vmax.f32 %v632_v39, 0.0  ;;  %v629_v43 = vmul.f32 %v1492_v47, %v1492_v47 }
 0x14d   : > { %v597_v9 = vadd.f32 %v596_v60, %v595_v42  ;;  %v580_v37 = vrot.slane %v579_v36, 4  ;;  %v621_v52 = vmul.f32 %v1358_v40, %v592_v63  ;;  %v543_v28 = vadd.f32 %v542_v21, %v541_v33 }
 0x14e   : > { %v735_v57 = vmul.f32 %v664_v11, %v240_v6  ;;  %v1510_v50 = vadd.f32 1e-05, %v640_v38  ;;  %v641_v4 = vmax.f32 %v633_v54, 0.0  ;;  %v529_v5 = vadd.f32 %v528_v7, %v1450_v49 }
 0x14f   : > { %v598_v48 = vrot.slane %v597_v9, 1  ;;  %v581_v31 = vadd.f32 %v580_v37, %v579_v36  ;;  %v637_v61 = vsub.f32 %v621_v52, %v629_v43  ;;  %v1516_v26 = vmul.f32 %v1358_v40, %v515_v45 }
 0x150   : > { %769 = vperm.xlu1 %1062, %v735_v57   ;;  %v1519_v39 = vmul.f32 %v1358_v40, %v543_v28  ;;  %v1070_v13 = vpop.eup %1069  ;;  %v618_v1 = vmul.f32 %v1358_v40, %v571_v29  ;;  %1071 = vrsqrt.f32 %v1510_v50  ;;  %v1725_v54 = vsub.f32 %v1329_v3, %v1397_v18 }
 0x151   : > { %v599_v15 = vadd.f32 %v598_v48, %v597_v9  ;;  %v582_v12 = vrot.slane %v581_v31, 2  ;;  %v696_v49 = vmul.f32 %v1070_v13, %v1494_v46  ;;  %v645_v7 = vmax.f32 %v637_v61, 0.0  ;;  %v244_v48 = vld [vmem:[%s1712_s3 + $0x20] sm:$0xff] }
 0x152   : > { %v751_v42 = vmul.f32 %v1725_v54, %v735_v57  ;;  %v1531_v33 = vadd.f32 1e-05, %v641_v4  ;;  %v626_v2 = vmul.f32 %v1516_v26, %v1516_v26  ;;  %v630_v3 = vmul.f32 %v1519_v39, %v1519_v39 }
 0x153   : > { %v622_v62 = vmul.f32 %v1358_v40, %v599_v15  ;;  %v583_v51 = vadd.f32 %v582_v12, %v581_v31  ;;  %v697_v45 = vmul.f32 %v1070_v13, %v696_v49  ;;  %v1535_v60 = vadd.f32 1e-05, %v645_v7  ;;  %v252_v7 = vld [vmem:[%s1713_s4 + $0x20] sm:$0xff] }
 0x154   : > { %v1540_v18 = vmul.f32 %v1358_v40, %v529_v5  ;;  %1073 = vrsqrt.f32 %v1531_v33  ;;  %v634_v58 = vsub.f32 %v618_v1, %v626_v2  ;;  %v759_v29 = vadd.f32 %v751_v42, %v248_v30 }
 0x155   : > { %v584_v6 = vrot.slane %v583_v51, 1  ;;  %v698_v63 = vmul.f32 0.5, %v697_v45  ;;  %1075 = vrsqrt.f32 %v1535_v60  ;;  %v638_v21 = vsub.f32 %v622_v62, %v630_v3 }
 0x156   : > { %v1072_v36 = vpop.eup %1071  ;;  %v642_v11 = vmax.f32 %v634_v58, 0.0  ;;  %vm702_vm6 = vweird.f32 %v1070_v13  ;;  %v628_v52 = vmul.f32 %v1540_v18, %v1540_v18  ;;  %vm701_vm7 = vweird.f32 %v1494_v46 }
 0x157   : > { %v585_v9 = vadd.f32 %v584_v6, %v583_v51  ;;  %v699_v37 = vsub.f32 1.5, %v698_v63  ;;  %v666_v38 = vmul.f32 %v1072_v36, %v1510_v50  ;;  %v646_v43 = vmax.f32 %v638_v21, 0.0  ;;  %vm703_vm8 = vmor %vm701_vm7, %vm702_vm6 }
 0x158   : > { %825 = vperm.xlu1 %1062, %v759_v29   ;;  %v1548_v57 = vadd.f32 1e-05, %v642_v11  ;;  %v747_v49 = vsub.f32 %v1344_v20, %v1439_v19  ;;  %vm672_vm9 = vweird.f32 %v1072_v36  ;;  %v241_v20 = vld [vmem:[%s1712_s3 + $0x8] sm:$0xff]  ;;  %vm671_vm10 = vweird.f32 %v1510_v50 }
 0x159   : > { %v620_v28 = vmul.f32 %v1358_v40, %v585_v9  ;;  %v700_v31 = vmul.f32 %v1070_v13, %v699_v37  ;;  %v667_v4 = vmul.f32 %v1072_v36, %v666_v38  ;;  %v1554_v5 = vadd.f32 1e-05, %v646_v43  ;;  %vm673_vm11 = vmor %vm671_vm10, %vm672_vm9  ;;  %v249_v50 = vld [vmem:[%s1713_s4 + $0x8] sm:$0xff] }
 0x15a   : > { %v1556_v61 = vpop.eup %1073  ;;  %1077 = vrsqrt.f32 %v1548_v57  ;;  %v744_v21 = vsub.f32 %v1338_v14, %v1429_v59  ;;  %v246_v14 = vld [vmem:[%s1712_s3 + $0x30] sm:$0xff]  ;;  %vm721_vm13 = vweird.f32 %v1535_v60  ;;  %vm691_vm1 = vweird.f32 %v1548_v57 }
 0x15b   : > { %v636_v1 = vsub.f32 %v620_v28, %v628_v52  ;;  %v1076_v15 = vpop.eup %1075  ;;  %v704_v40 = vsel %vm703_vm8, %v1070_v13, %v700_v31  ;;  %v668_v12 = vmul.f32 0.5, %v667_v4  ;;  %v676_v54 = vmul.f32 %v1556_v61, %v1531_v33 }
 0x15c   : > { %v739_v42 = vmul.f32 %v704_v40, %v244_v48  ;;  %v716_v46 = vmul.f32 %v1076_v15, %v1535_v60  ;;  %1079 = vrsqrt.f32 %v1554_v5  ;;  %vm722_vm12 = vweird.f32 %v1076_v15  ;;  %v243_v60 = vld [vmem:[%s1712_s3 + $0x18] sm:$0xff] }
 0x15d   : > { %v669_v62 = vsub.f32 1.5, %v668_v12  ;;  %v677_v13 = vmul.f32 %v1556_v61, %v676_v54  ;;  %v644_v51 = vmax.f32 %v636_v1, 0.0  ;;  %vm723_vm14 = vmor %vm721_vm13, %vm722_vm12  ;;  %vm682_vm0 = vweird.f32 %v1556_v61 }
 0x15e   : > { %v755_v30 = vmul.f32 %v747_v49, %v739_v42  ;;  %v717_v2 = vmul.f32 %v1076_v15, %v716_v46  ;;  %vm681_vm3 = vweird.f32 %v1531_v33  ;;  %vm731_vm6 = vweird.f32 %v1554_v5  ;;  %v242_v33 = vld [vmem:[%s1712_s3 + $0x10] sm:$0xff] }
 0x15f   : > { %v670_v19 = vmul.f32 %v1072_v36, %v669_v62  ;;  %v1573_v45 = vadd.f32 1e-05, %v644_v51  ;;  %v678_v29 = vmul.f32 0.5, %v677_v13  ;;  %vm1595_vm5 = vmor %vm681_vm3, %vm682_vm0 }
 0x160   : > { %789 = vperm.xlu1 %1062, %v739_v42   ;;  %v1078_v3 = vpop.eup %1077  ;;  %v763_v6 = vadd.f32 %v755_v30, %v252_v7  ;;  %v718_v58 = vmul.f32 0.5, %v717_v2 }
 0x161   : > { %v674_v63 = vsel %vm673_vm11, %v1072_v36, %v670_v19  ;;  %v686_v9 = vmul.f32 %v1078_v3, %v1548_v57  ;;  %1081 = vrsqrt.f32 %v1573_v45  ;;  %v679_v28 = vsub.f32 1.5, %v678_v29  ;;  %v247_v57 = vld [vmem:[%s1712_s3 + $0x38] sm:$0xff] }
 0x162   : > { %v1080_v11 = vpop.eup %1079  ;;  %845 = vperm.xlu0 %1064, %v763_v6   ;;  %v736_v37 = vmul.f32 %v674_v63, %v241_v20  ;;  %v719_v38 = vsub.f32 1.5, %v718_v58  ;;  %vm692_vm15 = vweird.f32 %v1078_v3  ;;  %v746_v20 = vsub.f32 %v1388_v10, %v1516_v26 }
 0x163   : > { %v687_v43 = vmul.f32 %v1078_v3, %v686_v9  ;;  %v726_v52 = vmul.f32 %v1080_v11, %v1554_v5  ;;  %v680_v49 = vmul.f32 %v1556_v61, %v679_v28  ;;  %vm732_vm2 = vweird.f32 %v1080_v11  ;;  %vm693_vm4 = vmor %vm691_vm1, %vm692_vm15  ;;  %v245_v9 = vld [vmem:[%s1712_s3 + $0x28] sm:$0xff] }
 0x164   : > { %774 = vperm.xlu2 %1063, %v736_v37   ;;  %v752_v36 = vmul.f32 %v744_v21, %v736_v37  ;;  %v720_v59 = vmul.f32 %v1076_v15, %v719_v38  ;;  %vm733_vm7 = vmor %vm731_vm6, %vm732_vm2  ;;  %v750_v21 = vsub.f32 %v1419_v27, %v1519_v39  ;;  %vm711_vm9 = vweird.f32 %v1573_v45  ;;  %v255_v38 = vld [vmem:[%s1713_s4 + $0x38] sm:$0xff] }
 0x165   : > { %v688_v48 = vmul.f32 0.5, %v687_v43  ;;  %v727_v31 = vmul.f32 %v1080_v11, %v726_v52  ;;  %v684_v19 = vsel %vm1595_vm5, %v1556_v61, %v680_v49  ;;  %v749_v37 = vsub.f32 %v1378_v0, %v1492_v47  ;;  %v254_v43 = vld [vmem:[%s1713_s4 + $0x30] sm:$0xff] }
 0x166   : > { %v760_v4 = vadd.f32 %v752_v36, %v249_v50  ;;  %v724_v1 = vsel %vm723_vm14, %v1076_v15, %v720_v59  ;;  %v737_v10 = vmul.f32 %v684_v19, %v242_v33  ;;  %v250_v47 = vld [vmem:[%s1713_s4 + $0x10] sm:$0xff]  ;;  %v748_v59 = vsub.f32 %v1368_v53, %v1540_v18 }
 0x167   : > { %v741_v40 = vmul.f32 %v724_v1, %v246_v14  ;;  %v689_v12 = vsub.f32 1.5, %v688_v48  ;;  %v728_v54 = vmul.f32 0.5, %v727_v31  ;;  %v1082_v42 = vpop.eup %1081 }
 0x168   : > { %v706_v15 = vmul.f32 %v1082_v42, %v1573_v45  ;;  %vm712_vm8 = vweird.f32 %v1082_v42  ;;  %v745_v45 = vsub.f32 %v1352_v35, %v1462_v8  ;;  %v253_v35 = vld [vmem:[%s1713_s4 + $0x28] sm:$0xff] }
 0x169   : > { %799 = vperm.xlu1 %1062, %v741_v40   ;;  %v690_v46 = vmul.f32 %v1078_v3, %v689_v12  ;;  %v729_v7 = vsub.f32 1.5, %v728_v54  ;;  %vm713_vm10 = vmor %vm711_vm9, %vm712_vm8  ;;  %v757_v39 = vmul.f32 %v749_v37, %v741_v40 }
 0x16a   : > { %830 = vperm.xlu0 %1064, %v760_v4   ;;  %v707_v30 = vmul.f32 %v1082_v42, %v706_v15  ;;  %v753_v0 = vmul.f32 %v745_v45, %v737_v10 }
 0x16b   : > { %v694_v13 = vsel %vm693_vm4, %v1078_v3, %v690_v46  ;;  %v730_v51 = vmul.f32 %v1080_v11, %v729_v7  ;;  %v251_v3 = vld [vmem:[%s1713_s4 + $0x18] sm:$0xff]  ;;  %v765_v36 = vadd.f32 %v757_v39, %v254_v43 }
 0x16c   : > { %v738_v2 = vmul.f32 %v694_v13, %v243_v60  ;;  %v708_v5 = vmul.f32 0.5, %v707_v30  ;;  %v761_v14 = vadd.f32 %v753_v0, %v250_v47 }
 0x16d   : > { %v734_v6 = vsel %vm733_vm7, %v1080_v11, %v730_v51 }
 0x16e   : > { %v754_v58 = vmul.f32 %v746_v20, %v738_v2  ;;  %v742_v29 = vmul.f32 %v734_v6, %v247_v57  ;;  %v709_v63 = vsub.f32 1.5, %v708_v5 }
 0x170   : > { %v762_v26 = vadd.f32 %v754_v58, %v251_v3  ;;  %v710_v61 = vmul.f32 %v1082_v42, %v709_v63  ;;  %v758_v11 = vmul.f32 %v750_v21, %v742_v29 }
 0x172   : > { %779 = vperm.xlu0 %1064, %v737_v10   ;;  %840 = vperm.xlu1 %1062, %v762_v26   ;;  %v714_v50 = vsel %vm713_vm10, %v1082_v42, %v710_v61  ;;  %v766_v52 = vadd.f32 %v758_v11, %v255_v38  ;;  %v1731_v11 = vld [vmem:[#allocation6_spill] sm:$0xff] }
 0x173   : > { %v740_v27 = vmul.f32 %v714_v50, %v245_v9  ;;  %v1730_v9 = vld [vmem:[#allocation5_spill] sm:$0xff] }
 0x175   : > { %794 = vperm.xlu2 %1063, %v740_v27   ;;  %v756_v28 = vmul.f32 %v748_v59, %v740_v27 }
 0x177   : > { %v764_v8 = vadd.f32 %v756_v28, %v253_v35 }
 0x17a   : > { %860 = vperm.xlu0 %1064, %v766_v52   ;;  %855 = vperm.xlu1 %1062, %v765_v36  }
 0x17d   : > { %835 = vperm.xlu2 %1063, %v761_v14  }
 0x185   : > { %784 = vperm.xlu2 %1063, %v738_v2  }
 0x18d   : > { %804 = vperm.xlu2 %1063, %v742_v29  }
 0x195   : > { %850 = vperm.xlu2 %1063, %v764_v8  }
 0x1be   : > { %v775_v31 = vpop.permute.xlu2 %774 }
 0x1bf   : > { %v809_v7 = vmul.f32 %v775_v31, %v1260_v24  ;;  %v810_v15 = vmul.f32 %v775_v31, %v1262_v25 }
 0x1c2   : > { %v770_v48 = vpop.permute.xlu1 %769 }
 0x1c3   : > { %v807_v4 = vmul.f32 %v770_v48, %v1246_v16  ;;  %v808_v1 = vmul.f32 %v770_v48, %v1248_v17 }
 0x1ca   : > { %v826_v40 = vpop.permute.xlu1 %825 }
 0x1cb   : > { %v863_v12 = vadd.f32 %v826_v40, %v807_v4  ;;  %v864_v54 = vadd.f32 %v826_v40, %v808_v1 }
 0x1cd   : > { %879 = vst [vmem:[%s1643_s26] sm:$0xff] %v863_v12 }
 0x1ce   : > { %880 = vst [vmem:[%s1643_s26 + $0x8] sm:$0xff] %v864_v54 }
 0x1cf   : > { %v795_v53 = vpop.permute.xlu2 %794 }
 0x1d0   : > { %v817_v61 = vmul.f32 %v795_v53, %v1730_v9  ;;  %v818_v37 = vmul.f32 %v795_v53, %v1731_v11 }
 0x1d2   : > { %v790_v18 = vpop.permute.xlu1 %789 }
 0x1d3   : > { %v815_v42 = vmul.f32 %v790_v18, %v1256_v22  ;;  %v816_v16 = vmul.f32 %v790_v18, %v1258_v23 }
 0x1d4   : > { %v846_v17 = vpop.permute.xlu0 %845 }
 0x1d5   : > { %v871_v49 = vadd.f32 %v846_v17, %v815_v42  ;;  %v872_v60 = vadd.f32 %v846_v17, %v816_v16 }
 0x1d7   : > { %887 = vst [vmem:[%s1643_s26 + $0x40] sm:$0xff] %v871_v49  ;;  %v836_v46 = vpop.permute.xlu2 %835 }
 0x1d8   : > { %888 = vst [vmem:[%s1643_s26 + $0x48] sm:$0xff] %v872_v60 }
 0x1db   : > { %v800_v62 = vpop.permute.xlu1 %799 }
 0x1dc   : > { %v831_v13 = vpop.permute.xlu0 %830 }
 0x1dd   : > { %v865_v57 = vadd.f32 %v831_v13, %v809_v7  ;;  %v866_v51 = vadd.f32 %v831_v13, %v810_v15 }
 0x1df   : > { %881 = vst [vmem:[%s1643_s26 + $0x10] sm:$0xff] %v865_v57  ;;  %v785_v22 = vpop.permute.xlu2 %784 }
 0x1e0   : > { %882 = vst [vmem:[%s1643_s26 + $0x18] sm:$0xff] %v866_v51  ;;  %v813_v23 = vmul.f32 %v785_v22, %v1292_v41  ;;  %v814_v30 = vmul.f32 %v785_v22, %v1298_v44 }
 0x1e4   : > { %v780_v2 = vpop.permute.xlu0 %779  ;;  %v841_v24 = vpop.permute.xlu1 %840 }
 0x1e5   : > { %v811_v25 = vmul.f32 %v780_v2, %v1276_v32  ;;  %v812_v20 = vmul.f32 %v780_v2, %v1278_v34  ;;  %v869_v33 = vadd.f32 %v841_v24, %v813_v23  ;;  %v870_v19 = vadd.f32 %v841_v24, %v814_v30  ;;  %v1728_v32 = vld [vmem:[#allocation7_spill] sm:$0xff]  ;;  %v1729_v34 = vld [vmem:[#allocation8_spill] sm:$0xff] }
 0x1e6   : > { %v819_v58 = vmul.f32 %v800_v62, %v1728_v32  ;;  %v820_v29 = vmul.f32 %v800_v62, %v1729_v34 }
 0x1e7   : > { %v867_v3 = vadd.f32 %v836_v46, %v811_v25  ;;  %v868_v6 = vadd.f32 %v836_v46, %v812_v20  ;;  %885 = vst [vmem:[%s1643_s26 + $0x30] sm:$0xff] %v869_v33  ;;  %v805_v5 = vpop.permute.xlu2 %804 }
 0x1e8   : > { %886 = vst [vmem:[%s1643_s26 + $0x38] sm:$0xff] %v870_v19  ;;  %v821_v41 = vmul.f32 %v805_v5, %v1312_v55  ;;  %v822_v44 = vmul.f32 %v805_v5, %v1314_v56 }
 0x1e9   : > { %883 = vst [vmem:[%s1643_s26 + $0x20] sm:$0xff] %v867_v3 }
 0x1ea   : > { %884 = vst [vmem:[%s1643_s26 + $0x28] sm:$0xff] %v868_v6 }
 0x1ec   : > { %v861_v63 = vpop.permute.xlu0 %860  ;;  %v856_v10 = vpop.permute.xlu1 %855 }
 0x1ed   : > { %v877_v26 = vadd.f32 %v861_v63, %v821_v41  ;;  %v878_v55 = vadd.f32 %v861_v63, %v822_v44  ;;  %v875_v21 = vadd.f32 %v856_v10, %v819_v58  ;;  %v876_v56 = vadd.f32 %v856_v10, %v820_v29 }
 0x1ef   : > { %893 = vst [vmem:[%s1643_s26 + $0x70] sm:$0xff] %v877_v26  ;;  %v851_v38 = vpop.permute.xlu2 %850 }
 0x1f0   : > { %894 = vst [vmem:[%s1643_s26 + $0x78] sm:$0xff] %v878_v55  ;;  %v873_v50 = vadd.f32 %v851_v38, %v817_v61  ;;  %v874_v27 = vadd.f32 %v851_v38, %v818_v37 }
 0x1f1   : > { %891 = vst [vmem:[%s1643_s26 + $0x60] sm:$0xff] %v875_v21 }
 0x1f2   : > { %892 = vst [vmem:[%s1643_s26 + $0x68] sm:$0xff] %v876_v56 }
 0x1f3   : > { %889 = vst [vmem:[%s1643_s26 + $0x50] sm:$0xff] %v873_v50 }
 0x1f4   : > { %890 = vst [vmem:[%s1643_s26 + $0x58] sm:$0xff] %v874_v27 }
 0x1f5   : > { %1110 = shalt.err (!%p1107_p3)
}
 0x1f6   : > { %s1149_s23 = smov 256   ;;  %s1150_s25 = smov 16  }
 0x1f7   : > { %1019 = dma.vmem_to_hbm [thread:$0]  (%p1219_p5), %s909_s22, 2048, %s911_s9, %s896_s10, %s1149_s23, %s1149_s23, %s1150_s25  }
 0x1f8 PF: > { %p1025_p4 = scmp.ge.s32.totalorder %s1145_s21, 2  ;;  %s925_s26 = sand.u32 1, %s1133_s18  }
 0x1f9   : > { %s926_s30 = scalar_lea.sflag [#allocation3], %s925_s26 }
 0x1fa   : > { %p1022_p7 = pnand %p1025_p4, %p1223_p6 }
 0x1fc   : > { %p1023_p8 = pneg %p1022_p7 }
 0x1fe   : > { %1128 = dma.done.wait (%p1023_p8), %s926_s30, 2048  }
 0x1ff   : > { %1130 = vsyncadd (%p1023_p8), %s926_s30, 4294965248  ;;  %p15_p9 = scmp.ge.s32.totalorder %s1206_s24, 4   ;;  %s1732_s18 = smov %s1137_s19 }
 0x200   : > { %s1733_s19 = smov %s1141_s20  ;;  %s1734_s20 = smov %s1217_s27 }
 0x201   : > { %s1735_s21 = smov %s1206_s24  ;;  %17 = sbr.rel (!%p15_p9) target bundleno = 3 (0x3), region = 75 }
 0x206   :  { %932 = vsyncpa [#allocation3], 1 }
 0x207   :  { %934 = vsyncpa [#allocation3 + $0x1], 1 }

</bundles_post_ra>
